<compile_context>
chip_gen: v6e
topology: v6e:2x2x1
jax: 0.10.0
libtpu: 0.0.40
codegen_flags: <defaults>
</compile_context>

<pallas_src>
import jax
import jax.numpy as jnp
from jax.experimental import pallas as pl
from jax.experimental.pallas import tpu as pltpu


def _round_up(a: int, b: int) -> int:
    return ((a + b - 1) // b) * b


def _cdiv(a: int, b: int) -> int:
    return -(-a // b)


def _make_kernel(n_true: int, tile_n: int, tiles_per_core: int):
    def kernel(x_ref, wd_ref, bd_ref, lab_ref, out_ref, acc_ref):
        c = pl.program_id(0)
        i = pl.program_id(1)

        @pl.when(i == 0)
        def _init():
            acc_ref[...] = jnp.zeros_like(acc_ref)

        x = x_ref[...]                                   # (tile_n, D) f32
        wd = wd_ref[...]                                 # (8, D) f32, rows identical
        bd = bd_ref[0, 0]                                # scalar f32 (SMEM)

        # d = x . (w0 - w1), lane-dense as (1, tile_n): contract the feature
        # axis of both operands (transposed-RHS matmul -> MXU).
        d8 = jax.lax.dot_general(
            wd, x,
            dimension_numbers=(((1,), (1,)), ((), ())),
            preferred_element_type=jnp.float32,
        )                                                # (8, tile_n), rows identical
        d = d8[0:1, :] + bd                              # (1, tile_n)

        labels = lab_ref[...]                            # (1, tile_n) int32, lane-dense
        sgn = (2 * labels - 1).astype(jnp.float32)       # +1 if label==1 else -1
        t = sgn * d

        # numerically stable softplus(t) = max(t, 0) + log(1 + exp(-|t|))
        per = jnp.maximum(t, 0.0) + jnp.log(1.0 + jnp.exp(-jnp.abs(t)))

        # Select-mask rows past the true batch size; partial/clamped tiles hold
        # garbage VMEM, and the select keeps any NaN/Inf from propagating.
        lane = jax.lax.broadcasted_iota(jnp.int32, (1, tile_n), 1)
        row = (c * tiles_per_core + i) * tile_n + lane
        per = jnp.where(row < n_true, per, 0.0)

        acc_ref[...] += per                              # per-lane partial sums

        @pl.when(i == tiles_per_core - 1)
        def _fin():
            s = jnp.sum(acc_ref[...])                    # one XLU reduce per core
            out_ref[...] = jnp.full(out_ref.shape, s, jnp.float32)

    return kernel


def lossA_forward(x, labels, weight, bias, tile_n: int = 8192):
    """x: (N, 1, 128) f32, labels: (N,) int, weight: (2, 128) (PyTorch Linear
    layout), bias: (2,). Returns the scalar mean cross-entropy loss."""
    N = int(x.shape[0])
    D = int(x.shape[-1])

    x2d = jnp.squeeze(x, axis=1).astype(jnp.float32)     # (N, D) -- NOT padded

    # Tile sizing: lane/sublane aligned; big enough to hide the ~0.35 us
    # per-step cost even at v7x's 3.2 TB/s, small enough for every VMEM budget.
    tile_n = max(128, _round_up(min(int(tile_n), 8192), 128))
    if _round_up(N, 8) <= tile_n:
        tile_n = _round_up(max(N, 1), 8)                 # single-tile fast path
    num_tiles = _cdiv(N, tile_n)

    # Two reduction streams so v7x's second TensorCore isn't idle.
    n_cores = 2 if num_tiles >= 2 else 1
    tiles_per_core = _cdiv(num_tiles, n_cores)
    total_tiles = n_cores * tiles_per_core

    labels_i = labels.astype(jnp.int32)
    lab_len = total_tiles * tile_n
    if lab_len != N:
        labels_i = jnp.pad(labels_i, (0, lab_len - N))   # cheap (tiny int32)
    labels_row = labels_i.reshape(1, lab_len)            # lane-dense labels

    # Exploit C=2: only the class-difference direction matters.
    w_diff = (weight[0] - weight[1]).reshape(1, D).astype(jnp.float32)
    w_diff8 = jnp.broadcast_to(w_diff, (8, D))           # native-sublane LHS for the MXU
    b_diff = (bias[0] - bias[1]).reshape(1, 1).astype(jnp.float32)

    kernel = _make_kernel(N, tile_n, tiles_per_core)

    def x_map(c, i):
        t = c * tiles_per_core + i
        return (jnp.minimum(t, num_tiles - 1), 0)        # clamp: never fully OOB

    def lab_map(c, i):
        return (0, c * tiles_per_core + i)               # padded, always in bounds

    cost = pl.CostEstimate(
        flops=2 * 8 * N * D + 8 * N,                     # (8,D)x(D,tile_n) MXU + VPU
        transcendentals=2 * N,                           # exp + log per row
        bytes_accessed=N * D * 4 + N * 4 + 8 * D * 4 + 4 + n_cores * 8 * 128 * 4,
    )

    out = pl.pallas_call(
        kernel,
        out_shape=jax.ShapeDtypeStruct((n_cores * 8, 128), jnp.float32),
        grid=(n_cores, tiles_per_core),
        in_specs=[
            # TODO(synk): if a trace shows exposed DMA on v7x, add
            # pipeline_mode=pl.Buffered(3) to this x BlockSpec.
            pl.BlockSpec((tile_n, D), x_map),                     # x tile (pipelined)
            pl.BlockSpec((8, D), lambda c, i: (0, 0)),            # w_diff (resident)
            pl.BlockSpec(memory_space=pltpu.MemorySpace.SMEM),    # b_diff scalar
            pl.BlockSpec((1, tile_n), lab_map),                   # labels (lane-dense)
        ],
        out_specs=pl.BlockSpec((8, 128), lambda c, i: (c, 0)),    # per-core partial
        scratch_shapes=[pltpu.VMEM((1, tile_n), jnp.float32)],    # per-lane partials
        compiler_params=pltpu.CompilerParams(
            dimension_semantics=("parallel", "arbitrary")),
        cost_estimate=cost,
    )(x2d, w_diff8, b_diff, labels_row)

    partials = out[::8, 0]                                # one scalar per core
    return jnp.sum(partials) / jnp.float32(N)


if __name__ == "__main__":
    key = jax.random.PRNGKey(0)
    k_x, k_w, k_b, k_l = jax.random.split(key, 4)

    # Small shapes consistent with the module (Linear(128, 2)).
    N, D, C = 300, 128, 2
    x = jax.random.normal(k_x, (N, 1, D), dtype=jnp.float32)
    labels = jax.random.randint(k_l, (N,), 0, C, dtype=jnp.int32)

    # Deterministic parameter init mimicking nn.Linear(128, 2):
    # uniform(-1/sqrt(D), 1/sqrt(D)) for weight and bias.
    bound = 1.0 / jnp.sqrt(jnp.float32(D))
    weight = jax.random.uniform(k_w, (C, D), minval=-bound, maxval=bound,
                                dtype=jnp.float32)
    bias = jax.random.uniform(k_b, (C,), minval=-bound, maxval=bound,
                              dtype=jnp.float32)

    # Pure-JAX reference (full softmax cross-entropy, mean over batch).
    logits_ref = jnp.squeeze(x, 1) @ weight.T + bias
    lse_ref = jax.nn.logsumexp(logits_ref, axis=-1)
    tgt_ref = jnp.take_along_axis(logits_ref, labels[:, None], axis=-1)[:, 0]
    loss_ref = jnp.mean(lse_ref - tgt_ref)

    # 1) Default tiling (single-tile fast path for this small N).
    loss = lossA_forward(x, labels, weight, bias)
    jax.block_until_ready(loss)
    assert jnp.allclose(loss, loss_ref, atol=1e-5, rtol=1e-5), (loss, loss_ref)

    # 2) Tiny tile ONLY to exercise the multi-tile / dual-core reduction path
    #    (including the clamped+masked extra tile) in this correctness test;
    #    this is not a performance setting.
    loss2 = lossA_forward(x, labels, weight, bias, tile_n=128)
    jax.block_until_ready(loss2)
    assert jnp.allclose(loss2, loss_ref, atol=1e-5, rtol=1e-5), (loss2, loss_ref)

    print("KERNEL_OK")
</pallas_src>

<mosaic_0001>
module attributes {stable_mosaic.version = 11 : i64} {
  func.func @kernel(%arg0: i32, %arg1: i32, %arg2: memref<304x128xf32, #tpu.memory_space<vmem>>, %arg3: memref<8x128xf32, #tpu.memory_space<vmem>>, %arg4: memref<1x1xf32, #tpu.memory_space<smem>>, %arg5: memref<1x304xi32, #tpu.memory_space<vmem>>, %arg6: memref<8x128xf32, #tpu.memory_space<vmem>>, %arg7: memref<1x304xf32, #tpu.memory_space<vmem>>) attributes {dimension_semantics = [#tpu.dimension_semantics<parallel>, #tpu.dimension_semantics<arbitrary>], iteration_bounds = array<i64: 1, 1>, scalar_prefetch = 0 : i64, scratch_operands = 1 : i64, tpu.core_type = #tpu.core_type<tc>, window_params = [{transform_indices = @transform_0, window_bounds = array<i64: 304, 128>}, {pipeline_mode = #tpu.pipeline_mode<synchronous>, transform_indices = @transform_1, window_bounds = array<i64: 8, 128>}, {transform_indices = @transform_2, window_bounds = array<i64: 1, 1>}, {transform_indices = @transform_3, window_bounds = array<i64: 1, 304>}, {transform_indices = @transform_4, window_bounds = array<i64: 8, 128>}]} {
    %c0_i32 = arith.constant 0 : i32
    %0 = arith.cmpi eq, %arg1, %c0_i32 : i32
    %1 = arith.extui %0 : i1 to i32
    %c0_i32_0 = arith.constant 0 : i32
    %2 = arith.cmpi ne, %1, %c0_i32_0 : i32
    scf.if %2 {
      %cst_19 = arith.constant 0.000000e+00 : f32
      %43 = vector.broadcast %cst_19 : f32 to vector<1x304xf32>
      %c0_20 = arith.constant 0 : index
      %c0_21 = arith.constant 0 : index
      %44 = vector.load %arg7[%c0_20, %c0_21] : memref<1x304xf32, #tpu.memory_space<vmem>>, vector<1x304xf32>
      tpu.vector_store %arg7[%c0_20, %c0_21], %43 {strides = array<i32>} : memref<1x304xf32, #tpu.memory_space<vmem>>, vector<1x304xf32>,
    } else {
    }
    %c0 = arith.constant 0 : index
    %c0_1 = arith.constant 0 : index
    %3 = vector.load %arg2[%c0, %c0_1] : memref<304x128xf32, #tpu.memory_space<vmem>>, vector<304x128xf32>
    %c0_2 = arith.constant 0 : index
    %c0_3 = arith.constant 0 : index
    %4 = vector.load %arg3[%c0_2, %c0_3] : memref<8x128xf32, #tpu.memory_space<vmem>>, vector<8x128xf32>
    %c0_4 = arith.constant 0 : index
    %c0_5 = arith.constant 0 : index
    %5 = memref.load %arg4[%c0_4, %c0_5] : memref<1x1xf32, #tpu.memory_space<smem>>
    %cst = arith.constant dense<0.000000e+00> : vector<8x304xf32>
    %6 = tpu.matmul %4, %3, %cst {dimension_numbers = #tpu.dot_dimension_numbers<[1], [1], [0], [0], [0, 0, 1, 0], [], []>} : vector<8x128xf32>, vector<304x128xf32>, vector<8x304xf32> -> vector<8x304xf32>
    %7 = vector.extract_strided_slice %6 {offsets = [0, 0], sizes = [1, 304], strides = [1, 1]} : vector<8x304xf32> to vector<1x304xf32>
    %8 = vector.broadcast %5 : f32 to vector<1x304xf32>
    %9 = arith.addf %7, %8 : vector<1x304xf32>
    %c0_6 = arith.constant 0 : index
    %c0_7 = arith.constant 0 : index
    %10 = vector.load %arg5[%c0_6, %c0_7] : memref<1x304xi32, #tpu.memory_space<vmem>>, vector<1x304xi32>
    %c2_i32 = arith.constant 2 : i32
    %11 = vector.broadcast %c2_i32 : i32 to vector<1x304xi32>
    %12 = arith.muli %11, %10 : vector<1x304xi32>
    %c1_i32 = arith.constant 1 : i32
    %13 = vector.broadcast %c1_i32 : i32 to vector<1x304xi32>
    %14 = arith.subi %12, %13 : vector<1x304xi32>
    %15 = arith.sitofp %14 : vector<1x304xi32> to vector<1x304xf32>
    %16 = arith.mulf %15, %9 : vector<1x304xf32>
    %cst_8 = arith.constant 0.000000e+00 : f32
    %17 = vector.broadcast %cst_8 : f32 to vector<1x304xf32>
    %18 = arith.maximumf %16, %17 : vector<1x304xf32>
    %19 = math.absf %16 : vector<1x304xf32>
    %cst_9 = arith.constant 0.000000e+00 : f32
    %20 = vector.broadcast %cst_9 : f32 to vector<1x304xf32>
    %21 = arith.subf %20, %19 : vector<1x304xf32>
    %22 = math.exp %21 : vector<1x304xf32>
    %cst_10 = arith.constant 1.000000e+00 : f32
    %23 = vector.broadcast %cst_10 : f32 to vector<1x304xf32>
    %24 = arith.addf %23, %22 : vector<1x304xf32>
    %25 = math.log %24 : vector<1x304xf32>
    %26 = arith.addf %18, %25 : vector<1x304xf32>
    %27 = tpu.iota {dimensions = array<i32: 1>} : vector<1x304xi32>
    %c1_i32_11 = arith.constant 1 : i32
    %28 = arith.muli %arg0, %c1_i32_11 : i32
    %29 = arith.addi %28, %arg1 : i32
    %c304_i32 = arith.constant 304 : i32
    %30 = arith.muli %29, %c304_i32 : i32
    %31 = vector.broadcast %30 : i32 to vector<1x304xi32>
    %32 = arith.addi %31, %27 : vector<1x304xi32>
    %c300_i32 = arith.constant 300 : i32
    %33 = vector.broadcast %c300_i32 : i32 to vector<1x304xi32>
    %34 = arith.cmpi slt, %32, %33 : vector<1x304xi32>
    %cst_12 = arith.constant 0.000000e+00 : f32
    %35 = vector.broadcast %cst_12 : f32 to vector<1x304xf32>
    %36 = arith.select %34, %26, %35 : vector<1x304xi1>, vector<1x304xf32>
    %c0_13 = arith.constant 0 : index
    %c0_14 = arith.constant 0 : index
    %37 = vector.load %arg7[%c0_13, %c0_14] : memref<1x304xf32, #tpu.memory_space<vmem>>, vector<1x304xf32>
    %38 = arith.addf %37, %36 : vector<1x304xf32>
    %c0_15 = arith.constant 0 : index
    %c0_16 = arith.constant 0 : index
    %39 = vector.load %arg7[%c0_15, %c0_16] : memref<1x304xf32, #tpu.memory_space<vmem>>, vector<1x304xf32>
    tpu.vector_store %arg7[%c0_15, %c0_16], %38 {strides = array<i32>} : memref<1x304xf32, #tpu.memory_space<vmem>>, vector<1x304xf32>,
    %c0_i32_17 = arith.constant 0 : i32
    %40 = arith.cmpi eq, %arg1, %c0_i32_17 : i32
    %41 = arith.extui %40 : i1 to i32
    %c0_i32_18 = arith.constant 0 : i32
    %42 = arith.cmpi ne, %41, %c0_i32_18 : i32
    scf.if %42 {
      %c0_19 = arith.constant 0 : index
      %c0_20 = arith.constant 0 : index
      %43 = vector.load %arg7[%c0_19, %c0_20] : memref<1x304xf32, #tpu.memory_space<vmem>>, vector<1x304xf32>
      %44 = vector.shape_cast %43 : vector<1x304xf32> to vector<1x1x304xf32>
      %cst_21 = arith.constant dense<0.000000e+00> : vector<1xf32>
      %45 = vector.multi_reduction <add>, %44, %cst_21 [1, 2] : vector<1x1x304xf32> to vector<1xf32>
      %46 = vector.shape_cast %45 : vector<1xf32> to vector<1x1x1xf32>
      %47 = vector.extract %46[0, 0, 0] : f32 from vector<1x1x1xf32>
      %48 = vector.broadcast %47 : f32 to vector<8x128xf32>
      %c0_22 = arith.constant 0 : index
      %c0_23 = arith.constant 0 : index
      %49 = vector.load %arg6[%c0_22, %c0_23] : memref<8x128xf32, #tpu.memory_space<vmem>>, vector<8x128xf32>
      tpu.vector_store %arg6[%c0_22, %c0_23], %48 {strides = array<i32>} : memref<8x128xf32, #tpu.memory_space<vmem>>, vector<8x128xf32>,
    } else {
    }
    return
  }
  func.func @transform_0(%arg0: i32, %arg1: i32) -> (i32, i32) {
    %c1_i32 = arith.constant 1 : i32
    %0 = arith.muli %arg0, %c1_i32 : i32
    %1 = arith.addi %0, %arg1 : i32
    %c0_i32 = arith.constant 0 : i32
    %2 = arith.minsi %1, %c0_i32 : i32
    %c0_i32_0 = arith.constant 0 : i32
    %c0_i32_1 = arith.constant 0 : i32
    return %2, %c0_i32_0 : i32, i32
  }
  func.func @transform_1(%arg0: i32, %arg1: i32) -> (i32, i32) {
    %c0_i32 = arith.constant 0 : i32
    %c0_i32_0 = arith.constant 0 : i32
    %c0_i32_1 = arith.constant 0 : i32
    return %c0_i32, %c0_i32_0 : i32, i32
  }
  func.func @transform_2(%arg0: i32, %arg1: i32) -> (i32, i32) {
    %c0_i32 = arith.constant 0 : i32
    %c0_i32_0 = arith.constant 0 : i32
    %c0_i32_1 = arith.constant 0 : i32
    return %c0_i32, %c0_i32_0 : i32, i32
  }
  func.func @transform_3(%arg0: i32, %arg1: i32) -> (i32, i32) {
    %c1_i32 = arith.constant 1 : i32
    %0 = arith.muli %arg0, %c1_i32 : i32
    %1 = arith.addi %0, %arg1 : i32
    %c0_i32 = arith.constant 0 : i32
    %c0_i32_0 = arith.constant 0 : i32
    return %c0_i32, %1 : i32, i32
  }
  func.func @transform_4(%arg0: i32, %arg1: i32) -> (i32, i32) {
    %c0_i32 = arith.constant 0 : i32
    %c0_i32_0 = arith.constant 0 : i32
    return %arg0, %c0_i32 : i32, i32
  }
}

</mosaic_0001>

<bundles_post_ra>
// kernel: tpu_custom_call.1
= control target key start
LH: loop header
LB: loop body
LE: loop exit
PB: predicated region body
PF: predicated region fallthrough
CT: control target
= control target key end

     0   :  { %10 = vsyncpa [#allocation5], 0  ;;  %s635_s0 = inlined_call_operand.hbm [shape: f32[300,128], index: 0, kind: input, shape index: {}]   ;;  %s636_s1 = inlined_call_operand.hbm [shape: f32[8,128], index: 1, kind: input, shape index: {}]   ;;  %s637_s2 = inlined_call_operand.<no memory space> [shape: f32[1,1], index: 2, kind: input, shape index: {}]   ;;  %s638_s3 = inlined_call_operand.vmem [shape: s32[1,304], index: 3, kind: input, shape index: {}]   ;;  %s639_s4 = inlined_call_operand.hbm [shape: f32[8,128], index: 4, kind: output, shape index: {}]  }
   0x1   :  { %11 = vsyncpa [#allocation8], 0 }
   0x2   :  { %12 = vsyncpa [#allocation6], 0  ;;  %s571_s15 = smov [#allocation4]  }
   0x3   :  { %s24_s16 = sshll.u32 %s571_s15, 4  ;;  %s25_s16 = int_to_ptr.vmem [resolvable:$true] %s24_s16 }
   0x4   :  { %s513_s17 = scalar_lea.vmem %s25_s16, 4864  ;;  %p518_p1 = scmp.lt.s32.totalorder %s25_s16, %s25_s16 }
   0x5   :  { %p514_p0 = scmp.ne.s32.totalorder %s25_s16, %s513_s17  ;;  %p519_p2 = scmp.lt.s32.totalorder %s513_s17, %s513_s17 }
   0x7   :  { %p520_p3 = por %p519_p2, %p518_p1 }
   0x9   :  { %p521_p4 = pnand %p520_p3, %p514_p0 }
   0xb   :  { %524 = shalt.err (!%p521_p4)
}
   0xc   :  { %s572_s18 = smov 128   ;;  %s573_s19 = smov 8  }
   0xd   :  { %30 = dma.hbm_to_vmem [thread:$0]  %s635_s0, 4864, %s25_s16, [#allocation5], %s572_s18, %s572_s18, %s573_s19  }
   0xe   :  { %s574_s22 = smov [#allocation7]  }
   0xf   :  { %s37_s23 = sshll.u32 %s574_s22, 4  ;;  %s38_s23 = int_to_ptr.vmem [resolvable:$true] %s37_s23 }
  0x10   :  { %s533_s24 = scalar_lea.vmem %s38_s23, 128  ;;  %p538_p6 = scmp.lt.s32.totalorder %s38_s23, %s38_s23 }
  0x11   :  { %p534_p5 = scmp.ne.s32.totalorder %s38_s23, %s533_s24  ;;  %p539_p7 = scmp.lt.s32.totalorder %s533_s24, %s533_s24 }
  0x13   :  { %p540_p8 = por %p539_p7, %p538_p6 }
  0x15   :  { %p541_p9 = pnand %p540_p8, %p534_p5 }
  0x17   :  { %544 = shalt.err (!%p541_p9)
}
  0x18   :  { %40 = dma.hbm_to_vmem [thread:$0]  %s636_s1, 128, %s38_s23, [#allocation8]  }
  0x19   :  { %565 = dma.done.wait [#allocation5], 4864  }
  0x1a   :  { %566 = vsyncadd [#allocation5], 4294962432 }
  0x1b   :  { %567 = dma.done.wait [#allocation8], 128  }
  0x1c   :  { %568 = vsyncadd [#allocation8], 4294967168  ;;  %v575_v0 = vmov 0.0   ;;  %vm576_vm0 = vmmov 0   ;;  %v114_v1 = vld [vmem:[#allocation4 + $0xf8] sm:$0xff]  ;;  %v113_v3 = vld [vmem:[#allocation4 + $0xf0] sm:$0xff]  ;;  %v78_v40 = vlaneseq  ;;  %v264_v50 = vstv %s637_s2 }
  0x1d   :  { %476 = vmatprep.subr.mxu1 %v575_v0  ;;  %488 = vmatprep.mubr.msk.f32.mxu1 %vm576_vm0, %v575_v0  ;;  %v98_v2 = vld [vmem:[#allocation4 + $0x78] sm:$0xff]  ;;  %v97_v4 = vld [vmem:[#allocation4 + $0x70] sm:$0xff]  ;;  %v112_v5 = vld [vmem:[#allocation4 + $0xe8] sm:$0xff]  ;;  %v577_v44 = vmov 1966171168   ;;  %vm395_vm3 = vcmask 1040384  }
  0x1e   :  { %435 = vmatprep.subr.mxu0 %v114_v1  ;;  %v96_v6 = vld [vmem:[#allocation4 + $0x68] sm:$0xff]  ;;  %v111_v8 = vld [vmem:[#allocation4 + $0xe0] sm:$0xff]  ;;  %v110_v11 = vld [vmem:[#allocation4 + $0xd8] sm:$0xff]  ;;  %vm617_vm1 = vcmp.lt.s32.totalorder %v78_v40, 304  ;;  %v277_v45 = vunpack.c.l.s4 %v577_v44  ;;  %v280_v47 = vshrl.u32 %v78_v40, 7  ;;  %vm399_vm4 = vcmask 385024  }
  0x1f   :  { %436 = vmatpush3.xpose.msra.mxu0 %v98_v2  ;;  %v120_v7 = vld [vmem:[#allocation4 + $0x128] sm:$0xff]  ;;  %v119_v9 = vld [vmem:[#allocation4 + $0x120] sm:$0xff]  ;;  %v121_v12 = vld [vmem:[#allocation7] sm:$0xff]  ;;  %82 = vst.msk [vmem:[#allocation2] sm:$0x7] %vm617_vm1, %v575_v0  ;;  %s578_s2 = smov [#allocation9]  }
  0x20   :  { %437 = vmatprep.subr.mxu0 %v113_v3  ;;  %477 = vmatpush3.xpose.msra.mxu1 %v120_v7  ;;  %v95_v10 = vld [vmem:[#allocation4 + $0x60] sm:$0xff]  ;;  %v118_v13 = vld [vmem:[#allocation4 + $0x118] sm:$0xff]  ;;  %v109_v15 = vld [vmem:[#allocation4 + $0xd0] sm:$0xff]  ;;  %v278_v46 = vunpack.c.0.s8 %v277_v45 }
  0x21   :  { %478 = vmatprep.subr.mxu1 %v575_v0  ;;  %467 = vmatprep.mubr.f32.mxu0 %v121_v12  ;;  %v94_v14 = vld [vmem:[#allocation4 + $0x58] sm:$0xff]  ;;  %v117_v16 = vld [vmem:[#allocation4 + $0x110] sm:$0xff]  ;;  %v108_v18 = vld [vmem:[#allocation4 + $0xc8] sm:$0xff] }
  0x22   :  { %v93_v17 = vld [vmem:[#allocation4 + $0x50] sm:$0xff]  ;;  %v116_v19 = vld [vmem:[#allocation4 + $0x108] sm:$0xff]  ;;  %v107_v21 = vld [vmem:[#allocation4 + $0xc0] sm:$0xff]  ;;  %v281_v51 = vsub.s32 %v278_v46, %v280_v47 }
  0x23   :  { %438 = vmatpush3.xpose.msra.mxu0 %v97_v4  ;;  %v92_v20 = vld [vmem:[#allocation4 + $0x48] sm:$0xff]  ;;  %v115_v22 = vld [vmem:[#allocation4 + $0x100] sm:$0xff]  ;;  %v106_v24 = vld [vmem:[#allocation4 + $0xb8] sm:$0xff] }
  0x24   :  { %439 = vmatprep.subr.mxu0 %v112_v5  ;;  %479 = vmatpush3.xpose.msra.mxu1 %v119_v9  ;;  %v91_v23 = vld [vmem:[#allocation4 + $0x40] sm:$0xff]  ;;  %v90_v25 = vld [vmem:[#allocation4 + $0x38] sm:$0xff]  ;;  %v105_v26 = vld [vmem:[#allocation4 + $0xb0] sm:$0xff]  ;;  %v325_v9 = vsub.s32 0, %v280_v47 }
  0x25   :  { %480 = vmatprep.subr.mxu1 %v575_v0  ;;  %v89_v27 = vld [vmem:[#allocation4 + $0x30] sm:$0xff]  ;;  %v104_v28 = vld [vmem:[#allocation4 + $0xa8] sm:$0xff]  ;;  %v103_v30 = vld [vmem:[#allocation4 + $0xa0] sm:$0xff] }
  0x26   :  { %v88_v29 = vld [vmem:[#allocation4 + $0x28] sm:$0xff]  ;;  %v87_v31 = vld [vmem:[#allocation4 + $0x20] sm:$0xff]  ;;  %v102_v32 = vld [vmem:[#allocation4 + $0x98] sm:$0xff] }
  0x27   :  { %440 = vmatpush3.xpose.msra.mxu0 %v96_v6  ;;  %v86_v33 = vld [vmem:[#allocation4 + $0x18] sm:$0xff]  ;;  %v101_v34 = vld [vmem:[#allocation4 + $0x90] sm:$0xff]  ;;  %v100_v36 = vld [vmem:[#allocation4 + $0x88] sm:$0xff]  ;;  %v310_v6 = vand.u32 127, %v78_v40 }
  0x28   :  { %441 = vmatprep.subr.mxu0 %v111_v8  ;;  %481 = vmatpush3.xpose.msra.mxu1 %v118_v13  ;;  %v85_v35 = vld [vmem:[#allocation4 + $0x10] sm:$0xff]  ;;  %v84_v37 = vld [vmem:[#allocation4 + $0x8] sm:$0xff]  ;;  %v99_v38 = vld [vmem:[#allocation4 + $0x80] sm:$0xff]  ;;  %v333_v13 = vsub.s32 2, %v280_v47 }
  0x29   :  { %482 = vmatprep.subr.mxu1 %v575_v0  ;;  %v83_v39 = vld [vmem:[#allocation4] sm:$0xff]  ;;  %v268_v48 = vld [vmem:[%s638_s3] sm:$0x7]  ;;  %v312_v8 = vadd.s32 256, %v310_v6  ;;  %s419_s3 = sshll.u32 %s578_s2, 4  ;;  %s420_s3 = int_to_ptr.vmem [resolvable:$true] %s419_s3 }
  0x2a   :  { %v269_v53 = vmul.u32 2, %v268_v48  ;;  %s545_s30 = scalar_lea.vmem %s420_s3, 128  ;;  %p550_p11 = scmp.lt.s32.totalorder %s420_s3, %s420_s3 }
  0x2b   :  { %442 = vmatpush3.xpose.msra.mxu0 %v95_v10  ;;  %vm321_vm2 = vcmp.lt.s32.totalorder %v312_v8, 300  ;;  %p546_p10 = scmp.ne.s32.totalorder %s420_s3, %s545_s30  ;;  %p551_p12 = scmp.lt.s32.totalorder %s545_s30, %s545_s30 }
  0x2c   :  { %443 = vmatprep.subr.mxu0 %v110_v11  ;;  %483 = vmatpush3.xpose.msra.mxu1 %v117_v16  ;;  %v434_v58 = vadd.s32 4294967295, %v269_v53 }
  0x2d   :  { %484 = vmatprep.subr.mxu1 %v575_v0  ;;  %p552_p13 = por %p551_p12, %p550_p11 }
  0x2e   :  { %v271_v61 = vcvt.s32.f32 %v434_v58 }
  0x2f   :  { %444 = vmatpush3.xpose.msra.mxu0 %v94_v14  ;;  %p553_p0 = pnand %p552_p13, %p546_p10 }
  0x30   :  { %445 = vmatprep.subr.mxu0 %v109_v15  ;;  %485 = vmatpush3.xpose.msra.mxu1 %v116_v19 }
  0x31   :  { %486 = vmatprep.subr.mxu1 %v575_v0 }
  0x33   :  { %446 = vmatpush3.xpose.msra.mxu0 %v93_v17 }
  0x34   :  { %447 = vmatprep.subr.mxu0 %v108_v18  ;;  %487 = vmatpush3.xpose.msra.mxu1 %v115_v22 }
  0x37   :  { %448 = vmatpush3.xpose.msra.mxu0 %v92_v20  ;;  %489 = vmatmul.mubr.f32.vlgmr.msra.gmra.mxu1 %v121_v12 }
  0x38   :  { %449 = vmatprep.subr.mxu0 %v107_v21 }
  0x3b   :  { %450 = vmatpush3.xpose.msra.mxu0 %v91_v23  ;;  %v341_v23 = vld [vmem:[#allocation2] sm:$0x7] }
  0x3c   :  { %451 = vmatprep.subr.mxu0 %v106_v24 }
  0x3f   :  { %452 = vmatpush3.xpose.msra.mxu0 %v90_v25 }
  0x40   :  { %453 = vmatprep.subr.mxu0 %v105_v26 }
  0x43   :  { %454 = vmatpush3.xpose.msra.mxu0 %v89_v27 }
  0x44   :  { %455 = vmatprep.subr.mxu0 %v104_v28 }
  0x47   :  { %456 = vmatpush3.xpose.msra.mxu0 %v88_v29 }
  0x48   :  { %457 = vmatprep.subr.mxu0 %v103_v30 }
  0x4b   :  { %458 = vmatpush3.xpose.msra.mxu0 %v87_v31 }
  0x4c   :  { %459 = vmatprep.subr.mxu0 %v102_v32 }
  0x4f   :  { %460 = vmatpush3.xpose.msra.mxu0 %v86_v33 }
  0x50   :  { %461 = vmatprep.subr.mxu0 %v101_v34 }
  0x53   :  { %462 = vmatpush3.xpose.msra.mxu0 %v85_v35 }
  0x54   :  { %463 = vmatprep.subr.mxu0 %v100_v36 }
  0x57   :  { %464 = vmatpush3.xpose.msra.mxu0 %v84_v37 }
  0x58   :  { %465 = vmatprep.subr.mxu0 %v99_v38 }
  0x5b   :  { %466 = vmatpush3.xpose.msra.mxu0 %v83_v39 }
  0x5e   :  { %468 = vmatmul.mubr.f32.vlgmr.msra.gmra.mxu0 %v121_v12  ;;  %v329_v12 = vsub.s32 1, %v280_v47 }
  0xf7   :  { %v260_v42 = vpop.f32.mrf.mxu1 }
  0xf8   :  { %v267_v52 = vadd.f32 %v264_v50, %v260_v42 }
  0xf9   :  { %v490_v43 = vpop.f32.mrf.mxu1 }
  0xfa   :  { %v289_v59 = vrot.slane %v267_v52, %v281_v51 }
 0x11e   :  { %v189_v49 = vpop.f32.mrf.mxu0 }
 0x11f   :  { %v265_v55 = vadd.f32 %v264_v50, %v189_v49 }
 0x120   :  { %v191_v54 = vpop.f32.mrf.mxu0 }
 0x121   :  { %v266_v56 = vadd.f32 %v264_v50, %v191_v54 }
 0x123   :  { %v275_v57 = vcombine.low %v265_v55, %v266_v56 }
 0x125   :  { %v282_v60 = vrot.slane %v275_v57, %v281_v51 }
 0x127   :  { %v290_v62 = vcombine.low %v282_v60, %v289_v59 }
 0x129   :  { %v297_v63 = vrot.slane %v290_v62, %v281_v51 }
 0x12b   :  { %v299_v0 = vmul.f32 %v297_v63, %v271_v61 }
 0x12d   :  { %v301_v1 = vand.u32 2147483647, %v299_v0  ;;  %v300_v10 = vmax.f32 %v299_v0, 0.0 }
 0x12f   :  { %v302_v2 = vsub.f32 0.0, %v301_v1 }
 0x131   :  { %v303_v3 = vmul.f32 1.442695, %v302_v2 }
 0x133   :  { %501 = vpow2.f32 %v303_v3 }
 0x140   :  { %v502_v4 = vpop.eup %501 }
 0x141   :  { %v305_v5 = vadd.f32 1.0, %v502_v4 }
 0x143   :  { %503 = vlog2.f32 %v305_v5 }
 0x150   :  { %v504_v7 = vpop.eup %503 }
 0x151   :  { %v307_v11 = vmul.f32 0.6931472, %v504_v7 }
 0x153   :  { %v308_v14 = vadd.f32 %v307_v11, %v300_v10 }
 0x155   :  { %v326_v15 = vrot.slane %v308_v14, %v325_v9  ;;  %v330_v16 = vrot.slane %v308_v14, %v329_v12  ;;  %v334_v17 = vrot.slane %v308_v14, %v333_v13 }
 0x157   :  { %v340_v18 = vsel %vm321_vm2, %v334_v17, 0.0  ;;  %v345_v19 = vcombine.low %v326_v15, %v330_v16 }
 0x158   :  { %v359_v20 = vrot.slane %v340_v18, %v281_v51 }
 0x159   :  { %v352_v21 = vrot.slane %v345_v19, %v281_v51 }
 0x15b   :  { %v360_v22 = vcombine.low %v352_v21, %v359_v20 }
 0x15d   :  { %v367_v24 = vrot.slane %v360_v22, %v281_v51 }
 0x15f   :  { %v369_v25 = vadd.f32 %v367_v24, %v341_v23 }
 0x161   :  { %374 = vst.msk [vmem:[#allocation2] sm:$0x7] %vm617_vm1, %v369_v25 }
 0x168   :  { %v378_v26 = vld [vmem:[#allocation2] sm:$0x7] }
 0x169   :  { %v383_v27 = vrot.slane %v378_v26, %v325_v9  ;;  %v387_v28 = vrot.slane %v378_v26, %v329_v12  ;;  %v391_v29 = vrot.slane %v378_v26, %v333_v13 }
 0x16b   :  { %v396_v30 = vsel %vm395_vm3, %v383_v27, 0.0  ;;  %v397_v31 = vsel %vm395_vm3, %v387_v28, 0.0  ;;  %v400_v33 = vsel %vm399_vm4, %v391_v29, 0.0 }
 0x16c   :  { %v398_v32 = vadd.f32 %v397_v31, %v396_v30 }
 0x16e   :  { %v401_v34 = vadd.f32 %v400_v33, %v398_v32 }
 0x170   :  { %402 = vadd.xlane.f32.xlu0 %v401_v34 }
 0x1f9   :  { %v403_v35 = vpop.xlane.xlu0 %402 }
 0x1fa   :  { %v404_v36 = vrot.slane %v403_v35, 4 }
 0x1fc   :  { %v405_v37 = vadd.f32 %v404_v36, %v403_v35 }
 0x1fe   :  { %v406_v38 = vrot.slane %v405_v37, 2 }
 0x200   :  { %v407_v39 = vadd.f32 %v406_v38, %v405_v37 }
 0x202   :  { %v408_v40 = vrot.slane %v407_v39, 1 }
 0x204   :  { %v409_v41 = vadd.f32 %v408_v40, %v407_v39 }
 0x206   :  { %491 = vpush %v409_v41 }
 0x237   :  { %s492_s29 = spop %491 }
 0x238   :  { %v411_v42 = vstv %s492_s29 }
 0x239   :  { %412 = vst [vmem:[#allocation9] sm:$0xff] %v411_v42 }
 0x23a   :  { %556 = shalt.err (!%p553_p0)
}
 0x23b   :  { %422 = dma.vmem_to_hbm [thread:$0]  %s420_s3, 128, %s639_s4, [#allocation6]  }
 0x23c   :  { %569 = dma.done.wait [#allocation6], 128  }
 0x23d   :  { %570 = vsyncadd [#allocation6], 4294967168 }
 0x23e   :  { %426 = vsyncpa [#allocation5], 1 }
 0x23f   :  { %427 = vsyncpa [#allocation8], 1 }
 0x240   :  { %428 = vsyncpa [#allocation6], 1 }

</bundles_post_ra>
